<compile_context>
chip_gen: v5e
topology: v5e:2x2
jax: 0.10.0
libtpu: 0.0.40
codegen_flags: <defaults>
</compile_context>

<pallas_src>
import functools
import math

import jax
import jax.numpy as jnp
from jax import lax
from jax.experimental import pallas as pl
from jax.experimental.pallas import tpu as pltpu


def _round_up(x, m):
    return ((x + m - 1) // m) * m


def _relu_flags(n_layers):
    # ReLU after every Linear except the latent projection (encoder.pop())
    # and the final output layer (decoder.pop()).
    flags = [True] * n_layers
    flags[n_layers // 2 - 1] = False
    flags[-1] = False
    return flags


def _autoencoder_kernel(*refs, relu_flags):
    # refs = (x_ref, w1, b1, ..., wN, bN, out_ref)
    # x_ref / out_ref blocks are (batch_tile, in_dim); hidden activations are
    # kept lane-dense as (features, batch_tile) (batch on the 128-lane axis).
    x_ref = refs[0]
    out_ref = refs[-1]
    param_refs = refs[1:-1]
    n_layers = len(param_refs) // 2

    xb = x_ref[...].astype(jnp.bfloat16)                 # (tile, in_dim)

    # ---- layer 0: (out0, tile) = W0 @ x^T  (NT contraction, MXU-native) ----
    w0 = param_refs[0][...]                              # bf16 (out0_p, in_dim)
    b0 = param_refs[1][...]                              # f32  (out0_p, 1)
    acc = lax.dot_general(w0, xb, (((1,), (1,)), ((), ())),
                          preferred_element_type=jnp.float32) + b0
    if relu_flags[0]:
        acc = jnp.maximum(acc, 0.0)

    # ---- middle layers: standard lane-dense matmuls, bf16 activations ------
    for li in range(1, n_layers - 1):
        hb = acc.astype(jnp.bfloat16)
        w = param_refs[2 * li][...]                      # bf16 (out_p, in_p)
        b = param_refs[2 * li + 1][...]                  # f32  (out_p, 1)
        acc = jnp.dot(w, hb, preferred_element_type=jnp.float32) + b
        if relu_flags[li]:
            acc = jnp.maximum(acc, 0.0)

    # ---- last layer: (tile, out) = h^T @ WL^T  (TN contraction, f32) -------
    wl = param_refs[-2][...]                             # f32 (in_p, out_dim)
    bl = param_refs[-1][...]                             # f32 (1, out_dim)
    out = lax.dot_general(acc, wl, (((0,), (0,)), ((), ())),
                          preferred_element_type=jnp.float32) + bl
    if relu_flags[-1]:
        out = jnp.maximum(out, 0.0)
    out_ref[...] = out.astype(out_ref.dtype)


def _fold_latent(params, flags):
    """Fold the latent pair (no nonlinearity between them) into one layer."""
    n = len(params)
    if n < 4:
        return params, flags
    i = n // 2 - 1
    if flags[i]:  # would only happen with add_sigmoid / nonstandard nets
        return params, flags
    wa, ba = params[i]
    wb, bb = params[i + 1]
    wf = wb @ wa                      # f32 composition (exact up to f32)
    bf = wb @ ba + bb
    params = params[:i] + [(wf, bf)] + params[i + 2:]
    flags = flags[:i] + [flags[i + 1]] + flags[i + 2:]
    return params, flags


def autoencoder_forward(x, params, *, batch_tile=None, fold_latent=True):
    """x: (batch, input_dim) f32.  params: list of (W[out,in] f32, b[out] f32)."""
    batch, input_dim = x.shape
    params = [(jnp.asarray(w, jnp.float32), jnp.asarray(b, jnp.float32))
              for w, b in params]
    flags = _relu_flags(len(params))
    if fold_latent:
        params, flags = _fold_latent(params, flags)
    n_layers = len(params)
    assert n_layers >= 2, "kernel expects at least two linear layers"
    relu_flags = tuple(flags)

    # ---- pad intermediate feature dims to multiples of 16 (exact) ----------
    dims = [input_dim] + [int(w.shape[0]) for w, _ in params]
    padded = [dims[0]] + [_round_up(d, 16) for d in dims[1:-1]] + [dims[-1]]

    flat_params = []
    for li, (w, b) in enumerate(params):
        out_f, in_f = w.shape
        p_in, p_out = padded[li], padded[li + 1]
        if li < n_layers - 1:
            w_p = jnp.zeros((p_out, p_in), jnp.float32).at[:out_f, :in_f].set(w)
            b_p = jnp.zeros((p_out, 1), jnp.float32).at[:out_f, 0].set(b)
            flat_params.append(w_p.astype(jnp.bfloat16))   # bf16 MXU input
            flat_params.append(b_p)                        # f32 bias
        else:
            # Last layer stored transposed (in, out) in f32 for the in-kernel
            # TN contraction that directly yields (batch_tile, out_dim).
            w_t = jnp.zeros((p_in, out_f), jnp.float32).at[:in_f, :out_f].set(w.T)
            b_p = b.reshape(1, out_f).astype(jnp.float32)
            flat_params.append(w_t)
            flat_params.append(b_p)

    # ---- batch tiling: big lane-count tiles, >=2 grid steps when possible --
    if batch_tile is None:
        batch_tile = 8192
    b_min = _round_up(batch, 128)
    batch_tile = max(128, min(_round_up(batch_tile, 128), b_min))
    n_steps = -(-b_min // batch_tile)          # cdiv
    if batch > 128 and n_steps < 2:
        n_steps = 2                            # v7x: feed both TensorCores
    batch_tile = _round_up(-(-b_min // n_steps), 128)
    b_pad = n_steps * batch_tile

    x_in = x if b_pad == batch else jnp.pad(x, ((0, b_pad - batch), (0, 0)))

    act_spec = pl.BlockSpec((batch_tile, input_dim), lambda i: (i, 0))

    def _resident(arr):   # whole array, constant block index -> stays in VMEM
        return pl.BlockSpec(arr.shape, lambda i: (0, 0))

    in_specs = [act_spec] + [_resident(p) for p in flat_params]

    flops = 2 * batch * sum(int(w.shape[0]) * int(w.shape[1]) for (w, _) in params)
    bytes_accessed = (2 * batch * input_dim * 4
                      + sum(int(p.size) * p.dtype.itemsize for p in flat_params))

    out = pl.pallas_call(
        functools.partial(_autoencoder_kernel, relu_flags=relu_flags),
        out_shape=jax.ShapeDtypeStruct((b_pad, input_dim), x.dtype),
        grid=(n_steps,),
        in_specs=in_specs,
        out_specs=act_spec,
        compiler_params=pltpu.CompilerParams(
            dimension_semantics=("parallel",),
            vmem_limit_bytes=32 * 1024 * 1024),
        cost_estimate=pl.CostEstimate(
            flops=flops, transcendentals=0, bytes_accessed=bytes_accessed),
    )(x_in, *flat_params)

    return out if b_pad == batch else out[:batch]


def init_autoencoder_params(key, input_dim, latent_dim=2, layers=(64, 32)):
    """PyTorch nn.Linear default init; W stored as (out_features, in_features)."""
    dims = [input_dim] + list(layers) + [latent_dim]
    enc = list(zip(dims[:-1], dims[1:]))                 # encoder (in, out)
    dec = [(o, i) for (i, o) in reversed(enc)]           # decoder (in, out)
    layout = enc + dec
    params = []
    for fan_in, fan_out in layout:
        key, kw, kb = jax.random.split(key, 3)
        bound = 1.0 / math.sqrt(fan_in)
        w = jax.random.uniform(kw, (fan_out, fan_in), jnp.float32, -bound, bound)
        b = jax.random.uniform(kb, (fan_out,), jnp.float32, -bound, bound)
        params.append((w, b))
    return params


def autoencoder_reference(x, params):
    """Plain-JAX f32 reference (true module semantics)."""
    relu_flags = _relu_flags(len(params))
    h = x.astype(jnp.float32)
    for li, (w, b) in enumerate(params):
        h = h @ w.T + b
        if relu_flags[li]:
            h = jnp.maximum(h, 0.0)
    return h


# TODO(synk): training-mode Dropout / fit() / pandas transform() API are
# host-side training utilities and are not part of the forward kernel.

if __name__ == "__main__":
    batch = 512
    input_dim = 16

    key = jax.random.PRNGKey(0)
    key, kx = jax.random.split(key)
    x = jax.random.normal(kx, (batch, input_dim), jnp.float32)

    params = init_autoencoder_params(key, input_dim, latent_dim=2, layers=(64, 32))

    # Default tiling -> 2 grid steps of 256 lanes for this small demo.
    out = autoencoder_forward(x, params)
    out = jax.block_until_ready(out)

    ref = autoencoder_reference(x, params)
    assert out.shape == (batch, input_dim)
    err = float(jnp.max(jnp.abs(out - ref)))
    assert jnp.allclose(out, ref, atol=2e-2, rtol=2e-2), (
        f"Pallas output mismatch (max abs err {err:.4g})")

    print("KERNEL_OK")
</pallas_src>

<mosaic_0001>
module attributes {stable_mosaic.version = 11 : i64} {
  func.func @_autoencoder_kernel(%arg0: i32, %arg1: memref<256x16xf32, #tpu.memory_space<vmem>>, %arg2: memref<64x16xbf16, #tpu.memory_space<vmem>>, %arg3: memref<64x1xf32, #tpu.memory_space<vmem>>, %arg4: memref<32x64xbf16, #tpu.memory_space<vmem>>, %arg5: memref<32x1xf32, #tpu.memory_space<vmem>>, %arg6: memref<32x32xbf16, #tpu.memory_space<vmem>>, %arg7: memref<32x1xf32, #tpu.memory_space<vmem>>, %arg8: memref<64x32xbf16, #tpu.memory_space<vmem>>, %arg9: memref<64x1xf32, #tpu.memory_space<vmem>>, %arg10: memref<64x16xf32, #tpu.memory_space<vmem>>, %arg11: memref<1x16xf32, #tpu.memory_space<vmem>>, %arg12: memref<256x16xf32, #tpu.memory_space<vmem>>) attributes {dimension_semantics = [#tpu.dimension_semantics<parallel>], iteration_bounds = array<i64: 2>, scalar_prefetch = 0 : i64, scratch_operands = 0 : i64, tpu.core_type = #tpu.core_type<tc>, window_params = [{transform_indices = @transform_0, window_bounds = array<i64: 256, 16>}, {pipeline_mode = #tpu.pipeline_mode<synchronous>, transform_indices = @transform_1, window_bounds = array<i64: 64, 16>}, {pipeline_mode = #tpu.pipeline_mode<synchronous>, transform_indices = @transform_2, window_bounds = array<i64: 64, 1>}, {pipeline_mode = #tpu.pipeline_mode<synchronous>, transform_indices = @transform_3, window_bounds = array<i64: 32, 64>}, {pipeline_mode = #tpu.pipeline_mode<synchronous>, transform_indices = @transform_4, window_bounds = array<i64: 32, 1>}, {pipeline_mode = #tpu.pipeline_mode<synchronous>, transform_indices = @transform_5, window_bounds = array<i64: 32, 32>}, {pipeline_mode = #tpu.pipeline_mode<synchronous>, transform_indices = @transform_6, window_bounds = array<i64: 32, 1>}, {pipeline_mode = #tpu.pipeline_mode<synchronous>, transform_indices = @transform_7, window_bounds = array<i64: 64, 32>}, {pipeline_mode = #tpu.pipeline_mode<synchronous>, transform_indices = @transform_8, window_bounds = array<i64: 64, 1>}, {pipeline_mode = #tpu.pipeline_mode<synchronous>, transform_indices = @transform_9, window_bounds = array<i64: 64, 16>}, {pipeline_mode = #tpu.pipeline_mode<synchronous>, transform_indices = @transform_10, window_bounds = array<i64: 1, 16>}, {transform_indices = @transform_11, window_bounds = array<i64: 256, 16>}]} {
    %c0 = arith.constant 0 : index
    %c0_0 = arith.constant 0 : index
    %0 = vector.load %arg1[%c0, %c0_0] : memref<256x16xf32, #tpu.memory_space<vmem>>, vector<256x16xf32>
    %1 = arith.truncf %0 : vector<256x16xf32> to vector<256x16xbf16>
    %c0_1 = arith.constant 0 : index
    %c0_2 = arith.constant 0 : index
    %2 = vector.load %arg2[%c0_1, %c0_2] : memref<64x16xbf16, #tpu.memory_space<vmem>>, vector<64x16xbf16>
    %c0_3 = arith.constant 0 : index
    %c0_4 = arith.constant 0 : index
    %3 = vector.load %arg3[%c0_3, %c0_4] : memref<64x1xf32, #tpu.memory_space<vmem>>, vector<64x1xf32>
    %cst = arith.constant dense<0.000000e+00> : vector<64x256xf32>
    %4 = tpu.matmul %2, %1, %cst {dimension_numbers = #tpu.dot_dimension_numbers<[1], [1], [0], [0], [0, 0, 1, 0], [], []>} : vector<64x16xbf16>, vector<256x16xbf16>, vector<64x256xf32> -> vector<64x256xf32>
    %5 = vector.broadcast %3 : vector<64x1xf32> to vector<64x256xf32>
    %6 = arith.addf %4, %5 : vector<64x256xf32>
    %cst_5 = arith.constant 0.000000e+00 : f32
    %7 = vector.broadcast %cst_5 : f32 to vector<64x256xf32>
    %8 = arith.maximumf %6, %7 : vector<64x256xf32>
    %9 = arith.truncf %8 : vector<64x256xf32> to vector<64x256xbf16>
    %c0_6 = arith.constant 0 : index
    %c0_7 = arith.constant 0 : index
    %10 = vector.load %arg4[%c0_6, %c0_7] : memref<32x64xbf16, #tpu.memory_space<vmem>>, vector<32x64xbf16>
    %c0_8 = arith.constant 0 : index
    %c0_9 = arith.constant 0 : index
    %11 = vector.load %arg5[%c0_8, %c0_9] : memref<32x1xf32, #tpu.memory_space<vmem>>, vector<32x1xf32>
    %cst_10 = arith.constant dense<0.000000e+00> : vector<32x256xf32>
    %12 = tpu.matmul %10, %9, %cst_10 {dimension_numbers = #tpu.dot_dimension_numbers<[1], [0], [0], [1], [0, 0, 1, 1], [], []>} : vector<32x64xbf16>, vector<64x256xbf16>, vector<32x256xf32> -> vector<32x256xf32>
    %13 = vector.broadcast %11 : vector<32x1xf32> to vector<32x256xf32>
    %14 = arith.addf %12, %13 : vector<32x256xf32>
    %cst_11 = arith.constant 0.000000e+00 : f32
    %15 = vector.broadcast %cst_11 : f32 to vector<32x256xf32>
    %16 = arith.maximumf %14, %15 : vector<32x256xf32>
    %17 = arith.truncf %16 : vector<32x256xf32> to vector<32x256xbf16>
    %c0_12 = arith.constant 0 : index
    %c0_13 = arith.constant 0 : index
    %18 = vector.load %arg6[%c0_12, %c0_13] : memref<32x32xbf16, #tpu.memory_space<vmem>>, vector<32x32xbf16>
    %c0_14 = arith.constant 0 : index
    %c0_15 = arith.constant 0 : index
    %19 = vector.load %arg7[%c0_14, %c0_15] : memref<32x1xf32, #tpu.memory_space<vmem>>, vector<32x1xf32>
    %cst_16 = arith.constant dense<0.000000e+00> : vector<32x256xf32>
    %20 = tpu.matmul %18, %17, %cst_16 {dimension_numbers = #tpu.dot_dimension_numbers<[1], [0], [0], [1], [0, 0, 1, 1], [], []>} : vector<32x32xbf16>, vector<32x256xbf16>, vector<32x256xf32> -> vector<32x256xf32>
    %21 = vector.broadcast %19 : vector<32x1xf32> to vector<32x256xf32>
    %22 = arith.addf %20, %21 : vector<32x256xf32>
    %cst_17 = arith.constant 0.000000e+00 : f32
    %23 = vector.broadcast %cst_17 : f32 to vector<32x256xf32>
    %24 = arith.maximumf %22, %23 : vector<32x256xf32>
    %25 = arith.truncf %24 : vector<32x256xf32> to vector<32x256xbf16>
    %c0_18 = arith.constant 0 : index
    %c0_19 = arith.constant 0 : index
    %26 = vector.load %arg8[%c0_18, %c0_19] : memref<64x32xbf16, #tpu.memory_space<vmem>>, vector<64x32xbf16>
    %c0_20 = arith.constant 0 : index
    %c0_21 = arith.constant 0 : index
    %27 = vector.load %arg9[%c0_20, %c0_21] : memref<64x1xf32, #tpu.memory_space<vmem>>, vector<64x1xf32>
    %cst_22 = arith.constant dense<0.000000e+00> : vector<64x256xf32>
    %28 = tpu.matmul %26, %25, %cst_22 {dimension_numbers = #tpu.dot_dimension_numbers<[1], [0], [0], [1], [0, 0, 1, 1], [], []>} : vector<64x32xbf16>, vector<32x256xbf16>, vector<64x256xf32> -> vector<64x256xf32>
    %29 = vector.broadcast %27 : vector<64x1xf32> to vector<64x256xf32>
    %30 = arith.addf %28, %29 : vector<64x256xf32>
    %cst_23 = arith.constant 0.000000e+00 : f32
    %31 = vector.broadcast %cst_23 : f32 to vector<64x256xf32>
    %32 = arith.maximumf %30, %31 : vector<64x256xf32>
    %c0_24 = arith.constant 0 : index
    %c0_25 = arith.constant 0 : index
    %33 = vector.load %arg10[%c0_24, %c0_25] : memref<64x16xf32, #tpu.memory_space<vmem>>, vector<64x16xf32>
    %c0_26 = arith.constant 0 : index
    %c0_27 = arith.constant 0 : index
    %34 = vector.load %arg11[%c0_26, %c0_27] : memref<1x16xf32, #tpu.memory_space<vmem>>, vector<1x16xf32>
    %cst_28 = arith.constant dense<0.000000e+00> : vector<256x16xf32>
    %35 = tpu.matmul %32, %33, %cst_28 {dimension_numbers = #tpu.dot_dimension_numbers<[0], [0], [1], [1], [0, 1, 1, 1], [], []>} : vector<64x256xf32>, vector<64x16xf32>, vector<256x16xf32> -> vector<256x16xf32>
    %36 = vector.broadcast %34 : vector<1x16xf32> to vector<256x16xf32>
    %37 = arith.addf %35, %36 : vector<256x16xf32>
    %c0_29 = arith.constant 0 : index
    %c0_30 = arith.constant 0 : index
    %38 = vector.load %arg12[%c0_29, %c0_30] : memref<256x16xf32, #tpu.memory_space<vmem>>, vector<256x16xf32>
    tpu.vector_store %arg12[%c0_29, %c0_30], %37 {strides = array<i32>} : memref<256x16xf32, #tpu.memory_space<vmem>>, vector<256x16xf32>,
    return
  }
  func.func @transform_0(%arg0: i32) -> (i32, i32) {
    %c0_i32 = arith.constant 0 : i32
    %c0_i32_0 = arith.constant 0 : i32
    return %arg0, %c0_i32 : i32, i32
  }
  func.func @transform_1(%arg0: i32) -> (i32, i32) {
    %c0_i32 = arith.constant 0 : i32
    %c0_i32_0 = arith.constant 0 : i32
    %c0_i32_1 = arith.constant 0 : i32
    return %c0_i32, %c0_i32_0 : i32, i32
  }
  func.func @transform_2(%arg0: i32) -> (i32, i32) {
    %c0_i32 = arith.constant 0 : i32
    %c0_i32_0 = arith.constant 0 : i32
    %c0_i32_1 = arith.constant 0 : i32
    return %c0_i32, %c0_i32_0 : i32, i32
  }
  func.func @transform_3(%arg0: i32) -> (i32, i32) {
    %c0_i32 = arith.constant 0 : i32
    %c0_i32_0 = arith.constant 0 : i32
    %c0_i32_1 = arith.constant 0 : i32
    return %c0_i32, %c0_i32_0 : i32, i32
  }
  func.func @transform_4(%arg0: i32) -> (i32, i32) {
    %c0_i32 = arith.constant 0 : i32
    %c0_i32_0 = arith.constant 0 : i32
    %c0_i32_1 = arith.constant 0 : i32
    return %c0_i32, %c0_i32_0 : i32, i32
  }
  func.func @transform_5(%arg0: i32) -> (i32, i32) {
    %c0_i32 = arith.constant 0 : i32
    %c0_i32_0 = arith.constant 0 : i32
    %c0_i32_1 = arith.constant 0 : i32
    return %c0_i32, %c0_i32_0 : i32, i32
  }
  func.func @transform_6(%arg0: i32) -> (i32, i32) {
    %c0_i32 = arith.constant 0 : i32
    %c0_i32_0 = arith.constant 0 : i32
    %c0_i32_1 = arith.constant 0 : i32
    return %c0_i32, %c0_i32_0 : i32, i32
  }
  func.func @transform_7(%arg0: i32) -> (i32, i32) {
    %c0_i32 = arith.constant 0 : i32
    %c0_i32_0 = arith.constant 0 : i32
    %c0_i32_1 = arith.constant 0 : i32
    return %c0_i32, %c0_i32_0 : i32, i32
  }
  func.func @transform_8(%arg0: i32) -> (i32, i32) {
    %c0_i32 = arith.constant 0 : i32
    %c0_i32_0 = arith.constant 0 : i32
    %c0_i32_1 = arith.constant 0 : i32
    return %c0_i32, %c0_i32_0 : i32, i32
  }
  func.func @transform_9(%arg0: i32) -> (i32, i32) {
    %c0_i32 = arith.constant 0 : i32
    %c0_i32_0 = arith.constant 0 : i32
    %c0_i32_1 = arith.constant 0 : i32
    return %c0_i32, %c0_i32_0 : i32, i32
  }
  func.func @transform_10(%arg0: i32) -> (i32, i32) {
    %c0_i32 = arith.constant 0 : i32
    %c0_i32_0 = arith.constant 0 : i32
    %c0_i32_1 = arith.constant 0 : i32
    return %c0_i32, %c0_i32_0 : i32, i32
  }
  func.func @transform_11(%arg0: i32) -> (i32, i32) {
    %c0_i32 = arith.constant 0 : i32
    %c0_i32_0 = arith.constant 0 : i32
    return %arg0, %c0_i32 : i32, i32
  }
}

</mosaic_0001>

<bundles_post_ra>
// kernel: tpu_custom_call.1
= control target key start
LH: loop header
LB: loop body
LE: loop exit
PB: predicated region body
PF: predicated region fallthrough
CT: control target
= control target key end

     0   :  { %s1601_s17 = smov 0   ;;  %s1974_s0 = inlined_call_operand.vmem [shape: f32[512,16], index: 0, kind: input, shape index: {}]   ;;  %s1975_s1 = inlined_call_operand.vmem [shape: bf16[64,16], index: 1, kind: input, shape index: {}]   ;;  %s1976_s2 = inlined_call_operand.vmem [shape: f32[64,1], index: 2, kind: input, shape index: {}]   ;;  %s1977_s3 = inlined_call_operand.vmem [shape: bf16[32,64], index: 3, kind: input, shape index: {}]   ;;  %s1978_s4 = inlined_call_operand.vmem [shape: f32[32,1], index: 4, kind: input, shape index: {}]   ;;  %s1979_s5 = inlined_call_operand.vmem [shape: bf16[32,32], index: 5, kind: input, shape index: {}]   ;;  %s1980_s6 = inlined_call_operand.vmem [shape: f32[32,1], index: 6, kind: input, shape index: {}]   ;;  %s1981_s7 = inlined_call_operand.vmem [shape: bf16[64,32], index: 7, kind: input, shape index: {}]   ;;  %s1982_s8 = inlined_call_operand.vmem [shape: f32[64,1], index: 8, kind: input, shape index: {}]   ;;  %s1983_s9 = inlined_call_operand.vmem [shape: f32[64,16], index: 9, kind: input, shape index: {}]   ;;  %s1984_s10 = inlined_call_operand.vmem [shape: f32[1,16], index: 10, kind: input, shape index: {}]   ;;  %s1985_s11 = inlined_call_operand.vmem [shape: f32[512,16], index: 11, kind: output, shape index: {}]  }
   0x1 LB: > { %s1383_s18 = sadd.s32 4294967295, %s1538_s17   ;;  %p1387_p0 = scmp.ge.s32.totalorder %s1538_s17, 1  ;;  %s1538_s17 = sphi %s1601_s17, %s21_s17  }
   0x2   : > { %p338_p1 = scmp.lt.s32.totalorder %s1538_s17, 3 }
   0x4   : > { %p339_p2 = pnand %p1387_p0, %p338_p1 }
   0x5   : > { %s1388_s19 = sshll.u32 (!%p339_p2), %s1383_s18, 5 }
   0x6   : > { %342 = sbr.rel (%p339_p2) target bundleno = 1242 (0x4da), region = 64  ;;  %p379_p3 = scmp.lt.s32.totalorder (!%p339_p2), %s1388_s19, 63 }
   0xb   : > { %s1987_s19 = smov (!%p379_p3, %s1388_s19), 63  ;;  %vm515_vm0 = vcmask 130048   ;;  %v453_v18 = vld [vmem:[%s1976_s2 + $0x30] sm:$0xff]  ;;  %v1540_v20 = vmov 0   ;;  %v454_v24 = vld [vmem:[%s1976_s2 + $0x38] sm:$0xff]  ;;  %v451_v25 = vld [vmem:[%s1976_s2 + $0x20] sm:$0xff] }
   0xc   : > { %s1389_s20 = sshll.u32 %s1987_s19, 3  ;;  %1528 = vset.pattern.permute.xlu0 %v1540_v20  ;;  %1529 = vset.pattern.permute.xlu1 %v1540_v20  ;;  %v452_v28 = vld [vmem:[%s1976_s2 + $0x28] sm:$0xff]  ;;  %v447_v31 = vld [vmem:[%s1976_s2] sm:$0xff]  ;;  %v665_v59 = vld [vmem:[%s1978_s4 + $0x18] sm:$0xff]  ;;  %vm696_vm1 = vcmask 523264   ;;  %vm791_vm2 = vcmask 261120  }
   0xd   : > { %s1617_s23 = scalar_lea.vmem %s1974_s0, %s1389_s20  ;;  %487 = vperm.xlu0 %1528, %v453_v18   ;;  %1530 = vset.pattern.permute.xlu2 %v1540_v20  ;;  %v448_v38 = vld [vmem:[%s1976_s2 + $0x8] sm:$0xff]  ;;  %v1669_v46 = vld [vmem:[%s1975_s1] sm:$0xff]  ;;  %v449_v60 = vld [vmem:[%s1976_s2 + $0x10] sm:$0xff]  ;;  %s1859_s22 = scalar_lea.vmem %s1985_s11, %s1389_s20 }
   0xe   : > { %v405_v0 = vld [vmem:[%s1617_s23 + $0x70] sm:$0xff]  ;;  %v406_v1 = vld [vmem:[%s1617_s23 + $0x78] sm:$0xff]  ;;  %v403_v3 = vld [vmem:[%s1617_s23 + $0x60] sm:$0xff]  ;;  %477 = vperm.xlu1 %1529, %v451_v25   ;;  %467 = vperm.xlu2 %1530, %v449_v60  }
   0xf   : > { %v430_v2 = vpack.c.bf16 %v406_v1, %v405_v0  ;;  %v404_v4 = vld [vmem:[%s1617_s23 + $0x68] sm:$0xff]  ;;  %v401_v8 = vld [vmem:[%s1617_s23 + $0x50] sm:$0xff]  ;;  %v402_v9 = vld [vmem:[%s1617_s23 + $0x58] sm:$0xff] }
  0x10   : > { %v429_v6 = vpack.c.bf16 %v404_v4, %v403_v3  ;;  %v428_v10 = vpack.c.bf16 %v402_v9, %v401_v8  ;;  %v399_v12 = vld [vmem:[%s1617_s23 + $0x40] sm:$0xff]  ;;  %v400_v13 = vld [vmem:[%s1617_s23 + $0x48] sm:$0xff]  ;;  %v397_v16 = vld [vmem:[%s1617_s23 + $0x30] sm:$0xff] }
  0x11   : > { %v550_v5 = vsel %vm515_vm0, %v430_v2, 0  ;;  %v427_v14 = vpack.c.bf16 %v400_v13, %v399_v12  ;;  %v398_v17 = vld [vmem:[%s1617_s23 + $0x38] sm:$0xff]  ;;  %v395_v22 = vld [vmem:[%s1617_s23 + $0x20] sm:$0xff]  ;;  %v396_v23 = vld [vmem:[%s1617_s23 + $0x28] sm:$0xff] }
  0x12   : > { %576 = vmatpush.bf16.xpose.msra.mxu1 %v550_v5  ;;  %v547_v7 = vsel %vm515_vm0, %v429_v6, 0  ;;  %v544_v11 = vsel %vm515_vm0, %v428_v10, 0  ;;  %v426_v19 = vpack.c.bf16 %v398_v17, %v397_v16  ;;  %v425_v26 = vpack.c.bf16 %v396_v23, %v395_v22  ;;  %v393_v29 = vld [vmem:[%s1617_s23 + $0x10] sm:$0xff]  ;;  %v394_v30 = vld [vmem:[%s1617_s23 + $0x18] sm:$0xff]  ;;  %v391_v34 = vld [vmem:[%s1617_s23] sm:$0xff] }
  0x13   : > { %v541_v15 = vsel %vm515_vm0, %v427_v14, 0  ;;  %v424_v32 = vpack.c.bf16 %v394_v30, %v393_v29  ;;  %v392_v35 = vld [vmem:[%s1617_s23 + $0x8] sm:$0xff]  ;;  %v421_v36 = vld [vmem:[%s1617_s23 + $0xf0] sm:$0xff]  ;;  %v422_v37 = vld [vmem:[%s1617_s23 + $0xf8] sm:$0xff] }
  0x14   : > { %v538_v21 = vsel %vm515_vm0, %v426_v19, 0  ;;  %v535_v27 = vsel %vm515_vm0, %v425_v26, 0  ;;  %v423_v39 = vpack.c.bf16 %v392_v35, %v391_v34  ;;  %v438_v40 = vpack.c.bf16 %v422_v37, %v421_v36  ;;  %v419_v43 = vld [vmem:[%s1617_s23 + $0xe0] sm:$0xff]  ;;  %v420_v44 = vld [vmem:[%s1617_s23 + $0xe8] sm:$0xff]  ;;  %v417_v48 = vld [vmem:[%s1617_s23 + $0xd0] sm:$0xff] }
  0x15   : > { %492 = vperm.xlu0 %1528, %v454_v24   ;;  %v532_v33 = vsel %vm515_vm0, %v424_v32, 0  ;;  %v437_v45 = vpack.c.bf16 %v420_v44, %v419_v43  ;;  %v418_v49 = vld [vmem:[%s1617_s23 + $0xd8] sm:$0xff]  ;;  %v415_v52 = vld [vmem:[%s1617_s23 + $0xc0] sm:$0xff]  ;;  %v416_v53 = vld [vmem:[%s1617_s23 + $0xc8] sm:$0xff] }
  0x16   : > { %482 = vperm.xlu1 %1529, %v452_v28   ;;  %v529_v41 = vsel %vm515_vm0, %v423_v39, 0  ;;  %v574_v42 = vsel %vm515_vm0, %v438_v40, 0  ;;  %v436_v50 = vpack.c.bf16 %v418_v49, %v417_v48  ;;  %v435_v54 = vpack.c.bf16 %v416_v53, %v415_v52  ;;  %v1682_v55 = vld [vmem:[%s1975_s1 + $0x8] sm:$0xff]  ;;  %v413_v57 = vld [vmem:[%s1617_s23 + $0xb0] sm:$0xff]  ;;  %v414_v58 = vld [vmem:[%s1617_s23 + $0xb8] sm:$0xff] }
  0x17   : > { %v571_v47 = vsel %vm515_vm0, %v437_v45, 0  ;;  %v662_v61 = vld [vmem:[%s1978_s4] sm:$0xff]  ;;  %v434_v62 = vpack.c.bf16 %v414_v58, %v413_v57  ;;  %v759_v63 = vld [vmem:[%s1980_s6 + $0x10] sm:$0xff]  ;;  %v450_v0 = vld [vmem:[%s1976_s2 + $0x18] sm:$0xff] }
  0x18   : > { %v568_v51 = vsel %vm515_vm0, %v436_v50, 0  ;;  %v565_v56 = vsel %vm515_vm0, %v435_v54, 0  ;;  %v760_v2 = vld [vmem:[%s1980_s6 + $0x18] sm:$0xff]  ;;  %v411_v3 = vld [vmem:[%s1617_s23 + $0xa0] sm:$0xff]  ;;  %v412_v4 = vld [vmem:[%s1617_s23 + $0xa8] sm:$0xff]  ;;  %472 = vperm.xlu2 %1530, %v450_v0  }
  0x19   : > { %v562_v1 = vsel %vm515_vm0, %v434_v62, 0  ;;  %v433_v5 = vpack.c.bf16 %v412_v4, %v411_v3  ;;  %v1500_v6 = vld [vmem:[%s1975_s1 + $0x10] sm:$0xff]  ;;  %v410_v9 = vld [vmem:[%s1617_s23 + $0x98] sm:$0xff]  ;;  %v758_v10 = vld [vmem:[%s1980_s6 + $0x8] sm:$0xff] }
  0x1a   : > { %577 = vmatpush.bf16.xpose.msra.mxu1 %v547_v7  ;;  %v409_v8 = vld [vmem:[%s1617_s23 + $0x90] sm:$0xff]  ;;  %v859_v16 = vld [vmem:[%s1982_s8 + $0x18] sm:$0xff]  ;;  %v407_v17 = vld [vmem:[%s1617_s23 + $0x80] sm:$0xff] }
  0x1b   : > { %v559_v7 = vsel %vm515_vm0, %v433_v5, 0  ;;  %v664_v12 = vld [vmem:[%s1978_s4 + $0x10] sm:$0xff]  ;;  %v432_v13 = vpack.c.bf16 %v410_v9, %v409_v8  ;;  %v408_v18 = vld [vmem:[%s1617_s23 + $0x88] sm:$0xff]  ;;  %v1501_v20 = vld [vmem:[%s1975_s1 + $0x18] sm:$0xff] }
  0x1c   : > { %v858_v14 = vld [vmem:[%s1982_s8 + $0x10] sm:$0xff]  ;;  %v431_v19 = vpack.c.bf16 %v408_v18, %v407_v17  ;;  %v663_v22 = vld [vmem:[%s1978_s4 + $0x8] sm:$0xff]  ;;  %v757_v25 = vld [vmem:[%s1980_s6] sm:$0xff] }
  0x1d   : > { %457 = vperm.xlu0 %1528, %v447_v31   ;;  %v861_v23 = vld [vmem:[%s1982_s8 + $0x28] sm:$0xff]  ;;  %v862_v24 = vld [vmem:[%s1982_s8 + $0x30] sm:$0xff]  ;;  %v863_v28 = vld [vmem:[%s1982_s8 + $0x38] sm:$0xff] }
  0x1e   : > { %462 = vperm.xlu1 %1529, %v448_v38   ;;  %v857_v26 = vld [vmem:[%s1982_s8 + $0x8] sm:$0xff]  ;;  %v1502_v5 = vld [vmem:[%s1977_s3] sm:$0xff] }
  0x20   : > { %678 = vperm.xlu2 %1530, %v664_v12  }
  0x22   : > { %578 = vmatpush.bf16.xpose.msra.mxu1 %v544_v11  ;;  %v856_v11 = vld [vmem:[%s1982_s8] sm:$0xff] }
  0x25   : > { %683 = vperm.xlu0 %1528, %v665_v59  }
  0x26   : > { %668 = vperm.xlu1 %1529, %v662_v61  }
  0x28   : > { %673 = vperm.xlu2 %1530, %v663_v22  }
  0x2a   : > { %579 = vmatpush.bf16.xpose.msra.mxu1 %v541_v15  ;;  %v556_v15 = vsel %vm515_vm0, %v432_v13, 0 }
  0x2d   : > { %773 = vperm.xlu0 %1528, %v759_v63  }
  0x2e   : > { %778 = vperm.xlu1 %1529, %v760_v2  }
  0x30   : > { %763 = vperm.xlu2 %1530, %v757_v25  }
  0x32   : > { %580 = vmatpush.bf16.xpose.msra.mxu1 %v538_v21  ;;  %v553_v21 = vsel %vm515_vm0, %v431_v19, 0 }
  0x35   : > { %768 = vperm.xlu0 %1528, %v758_v10  }
  0x36   : > { %866 = vperm.xlu1 %1529, %v856_v11   ;;  %v1503_v11 = vld [vmem:[%s1977_s3 + $0x8] sm:$0xff] }
  0x38   : > { %871 = vperm.xlu2 %1530, %v857_v26  }
  0x3a   : > { %581 = vmatpush.bf16.xpose.msra.mxu1 %v535_v27  ;;  %v860_v27 = vld [vmem:[%s1982_s8 + $0x20] sm:$0xff] }
  0x3d   : > { %876 = vperm.xlu0 %1528, %v858_v14  }
  0x3e   : > { %881 = vperm.xlu1 %1529, %v859_v16  }
  0x40   : > { %886 = vperm.xlu2 %1530, %v860_v27  }
  0x42   : > { %582 = vmatpush.bf16.xpose.msra.mxu1 %v532_v33 }
  0x45   : > { %891 = vperm.xlu0 %1528, %v861_v23  }
  0x46   : > { %896 = vperm.xlu1 %1529, %v862_v24  }
  0x48   : > { %901 = vperm.xlu2 %1530, %v863_v28  }
  0x4a   : > { %583 = vmatpush.bf16.xpose.msra.mxu1 %v529_v41 }
  0x51   : > { %1408 = vmatmul.msk.bf16.vlgmr.msra.gmra.mxu1 %vm515_vm0, %v1669_v46 }
  0x52   : > { %605 = vmatpush.bf16.xpose.msrb.mxu1 %v574_v42 }
  0x5a   : > { %606 = vmatpush.bf16.xpose.msrb.mxu1 %v571_v47 }
  0x61   : > { %1409 = vmatmul.msk.bf16.gmra.mxu1 %vm515_vm0, %v1682_v55 }
  0x62   : > { %607 = vmatpush.bf16.xpose.msrb.mxu1 %v568_v51 }
  0x68   : > { %v468_v37 = vpop.permute.xlu2 %467 }
  0x6a   : > { %608 = vmatpush.bf16.xpose.msrb.mxu1 %v565_v56 }
  0x71   : > { %1410 = vmatmul.msk.bf16.gmra.mxu1 %vm515_vm0, %v1500_v6 }
  0x72   : > { %609 = vmatpush.bf16.xpose.msrb.mxu1 %v562_v1  ;;  %v473_v45 = vpop.permute.xlu2 %472 }
  0x7a   : > { %610 = vmatpush.bf16.xpose.msrb.mxu1 %v559_v7 }
  0x7f   : > { %v488_v36 = vpop.permute.xlu0 %487 }
  0x80   : > { %v478_v35 = vpop.permute.xlu1 %477 }
  0x81   : > { %1411 = vmatmul.msk.bf16.gmra.mxu1 %vm515_vm0, %v1501_v20 }
  0x82   : > { %611 = vmatpush.bf16.xpose.msrb.mxu1 %v556_v15 }
  0x87   : > { %v493_v40 = vpop.permute.xlu0 %492 }
  0x88   : > { %v483_v39 = vpop.permute.xlu1 %482 }
  0x8a   : > { %612 = vmatpush.bf16.xpose.msrb.mxu1 %v553_v21 }
  0x90   : > { %v463_v52 = vpop.permute.xlu1 %462 }
  0x91   : > { %1412 = vmatmul.msk.bf16.vlgmr.msrb.gmra.mxu1 %vm515_vm0, %v1669_v46 }
  0xa1   : > { %1413 = vmatmul.msk.bf16.gmra.mxu1 %vm515_vm0, %v1682_v55  ;;  %v458_v55 = vpop.permute.xlu0 %457 }
  0xb1   : > { %1414 = vmatmul.msk.bf16.gmra.mxu1 %vm515_vm0, %v1500_v6 }
  0xc1   : > { %1415 = vmatmul.msk.bf16.gmra.mxu1 %vm515_vm0, %v1501_v20 }
  0xce   : > { %v585_v29 = vpop.f32.mrf.mxu1 }
  0xcf   : > { %v586_v61 = vadd.f32 %v585_v29, %v458_v55 }
  0xd1   : > { %v634_v1 = vmax.f32 %v586_v61, 0.0 }
  0xd6   : > { %v587_v30 = vpop.f32.mrf.mxu1 }
  0xd7   : > { %v588_v57 = vadd.f32 %v587_v30, %v463_v52 }
  0xd9   : > { %v636_v63 = vmax.f32 %v588_v57, 0.0 }
  0xdb   : > { %v650_v4 = vpack.c.bf16 %v636_v63, %v634_v1 }
  0xde   : > { %v590_v31 = vpop.f32.mrf.mxu1 }
  0xdf   : > { %v591_v53 = vadd.f32 %v590_v31, %v468_v37 }
  0xe1   : > { %v638_v62 = vmax.f32 %v591_v53, 0.0 }
  0xe6   : > { %v592_v32 = vpop.f32.mrf.mxu1 }
  0xe7   : > { %v593_v49 = vadd.f32 %v592_v32, %v473_v45 }
  0xe9   : > { %v640_v58 = vmax.f32 %v593_v49, 0.0  ;;  %v1504_v49 = vld [vmem:[%s1979_s5] sm:$0xff] }
  0xeb   : > { %v652_v0 = vpack.c.bf16 %v640_v58, %v638_v62 }
  0xee   : > { %v595_v33 = vpop.f32.mrf.mxu1 }
  0xef   : > { %v596_v46 = vadd.f32 %v595_v33, %v478_v35  ;;  %v679_v33 = vpop.permute.xlu2 %678 }
  0xf1   : > { %v642_v54 = vmax.f32 %v596_v46, 0.0 }
  0xf6   : > { %v597_v34 = vpop.f32.mrf.mxu1 }
  0xf7   : > { %v598_v43 = vadd.f32 %v597_v34, %v483_v39 }
  0xf9   : > { %v644_v50 = vmax.f32 %v598_v43, 0.0 }
  0xfb   : > { %v654_v60 = vpack.c.bf16 %v644_v50, %v642_v54  ;;  %v1505_v50 = vld [vmem:[%s1979_s5 + $0x8] sm:$0xff] }
  0xfe   : > { %v600_v38 = vpop.f32.mrf.mxu1 }
  0xff   : > { %v601_v41 = vadd.f32 %v600_v38, %v488_v36 }
 0x101   : > { %v646_v47 = vmax.f32 %v601_v41, 0.0  ;;  %v669_v41 = vpop.permute.xlu1 %668 }
 0x106   : > { %v602_v42 = vpop.f32.mrf.mxu1 }
 0x107   : > { %v603_v44 = vadd.f32 %v602_v42, %v493_v40 }
 0x109   : > { %v648_v48 = vmax.f32 %v603_v44, 0.0 }
 0x10b   : > { %v656_v51 = vpack.c.bf16 %v648_v48, %v646_v47 }
 0x10d   : > { %707 = vmatpush.bf16.msra.mxu3 %v656_v51 }
 0x10e   : > { %v614_v56 = vpop.f32.mrf.mxu1 }
 0x10f   : > { %v615_v59 = vadd.f32 %v614_v56, %v458_v55 }
 0x111   : > { %708 = vmatpush.bf16.msra.mxu3 %v654_v60  ;;  %v635_v6 = vmax.f32 %v615_v59, 0.0 }
 0x115   : > { %709 = vmatpush.bf16.msra.mxu3 %v652_v0 }
 0x116   : > { %v616_v2 = vpop.f32.mrf.mxu1 }
 0x117   : > { %v617_v3 = vadd.f32 %v616_v2, %v463_v52 }
 0x119   : > { %v637_v7 = vmax.f32 %v617_v3, 0.0  ;;  %710 = vmatpush.bf16.msra.mxu3 %v650_v4 }
 0x11b   : > { %v651_v8 = vpack.c.bf16 %v637_v7, %v635_v6 }
 0x11c   : > { %1424 = vmatmul.msk.bf16.vlgmr.msra.gmra.mxu3 %vm696_vm1, %v1502_v5 }
 0x11e   : > { %v619_v9 = vpop.f32.mrf.mxu1 }
 0x11f   : > { %v620_v25 = vadd.f32 %v619_v9, %v468_v37  ;;  %v674_v37 = vpop.permute.xlu2 %673 }
 0x121   : > { %v639_v29 = vmax.f32 %v620_v25, 0.0  ;;  %v1509_v25 = vld [vmem:[%s1981_s7 + $0x18] sm:$0xff] }
 0x126   : > { %v621_v10 = vpop.f32.mrf.mxu1 }
 0x127   : > { %v622_v22 = vadd.f32 %v621_v10, %v473_v45 }
 0x129   : > { %v641_v27 = vmax.f32 %v622_v22, 0.0  ;;  %v1508_v22 = vld [vmem:[%s1981_s7 + $0x10] sm:$0xff] }
 0x12b   : > { %v653_v30 = vpack.c.bf16 %v641_v27, %v639_v29 }
 0x12c   : > { %1425 = vmatmul.msk.bf16.gmra.mxu3 %vm696_vm1, %v1503_v11 }
 0x12e   : > { %v624_v12 = vpop.f32.mrf.mxu1 }
 0x12f   : > { %v625_v19 = vadd.f32 %v624_v12, %v478_v35  ;;  %v684_v35 = vpop.permute.xlu0 %683 }
 0x131   : > { %v643_v26 = vmax.f32 %v625_v19, 0.0  ;;  %v1506_v19 = vld [vmem:[%s1981_s7] sm:$0xff] }
 0x136   : > { %v626_v13 = vpop.f32.mrf.mxu1 }
 0x137   : > { %v627_v17 = vadd.f32 %v626_v13, %v483_v39  ;;  %v774_v3 = vpop.permute.xlu0 %773 }
 0x139   : > { %v645_v23 = vmax.f32 %v627_v17, 0.0 }
 0x13b   : > { %v655_v28 = vpack.c.bf16 %v645_v23, %v643_v26 }
 0x13e   : > { %v629_v14 = vpop.f32.mrf.mxu1 }
 0x13f   : > { %v630_v15 = vadd.f32 %v629_v14, %v488_v36  ;;  %v769_v7 = vpop.permute.xlu0 %768 }
 0x141   : > { %v647_v20 = vmax.f32 %v630_v15, 0.0 }
 0x146   : > { %v631_v16 = vpop.f32.mrf.mxu1 }
 0x147   : > { %v632_v18 = vadd.f32 %v631_v16, %v493_v40 }
 0x149   : > { %v649_v21 = vmax.f32 %v632_v18, 0.0 }
 0x14b   : > { %v657_v24 = vpack.c.bf16 %v649_v21, %v647_v20  ;;  %v1507_v20 = vld [vmem:[%s1981_s7 + $0x8] sm:$0xff] }
 0x14d   : > { %726 = vmatpush.bf16.msrb.mxu3 %v657_v24 }
 0x151   : > { %727 = vmatpush.bf16.msrb.mxu3 %v655_v28 }
 0x155   : > { %728 = vmatpush.bf16.msrb.mxu3 %v653_v30 }
 0x159   : > { %729 = vmatpush.bf16.msrb.mxu3 %v651_v8 }
 0x15c   : > { %1426 = vmatmul.msk.bf16.vlgmr.msrb.gmra.mxu3 %vm696_vm1, %v1502_v5  ;;  %v779_v5 = vpop.permute.xlu1 %778 }
 0x16c   : > { %1427 = vmatmul.msk.bf16.gmra.mxu3 %vm696_vm1, %v1503_v11  ;;  %v764_v11 = vpop.permute.xlu2 %763 }
 0x19f   : > { %v712_v31 = vpop.f32.mrf.mxu3 }
 0x1a0   : > { %v713_v42 = vadd.f32 %v712_v31, %v669_v41 }
 0x1a2   : > { %v741_v47 = vmax.f32 %v713_v42, 0.0 }
 0x1a7   : > { %v714_v32 = vpop.f32.mrf.mxu3 }
 0x1a8   : > { %v715_v39 = vadd.f32 %v714_v32, %v674_v37 }
 0x1aa   : > { %v743_v45 = vmax.f32 %v715_v39, 0.0 }
 0x1ac   : > { %v749_v48 = vpack.c.bf16 %v743_v45, %v741_v47  ;;  %v877_v45 = vpop.permute.xlu0 %876 }
 0x1af   : > { %v717_v34 = vpop.f32.mrf.mxu3 }
 0x1b0   : > { %v718_v36 = vadd.f32 %v717_v34, %v679_v33 }
 0x1b2   : > { %v745_v43 = vmax.f32 %v718_v36, 0.0 }
 0x1b7   : > { %v719_v38 = vpop.f32.mrf.mxu3 }
 0x1b8   : > { %v720_v40 = vadd.f32 %v719_v38, %v684_v35 }
 0x1ba   : > { %v747_v44 = vmax.f32 %v720_v40, 0.0 }
 0x1bc   : > { %v751_v46 = vpack.c.bf16 %v747_v44, %v745_v43 }
 0x1be   : > { %804 = vmatpush.bf16.msra.mxu2 %v751_v46 }
 0x1c2   : > { %805 = vmatpush.bf16.msra.mxu2 %v749_v48 }
 0x1c5   : > { %1436 = vmatmul.msk.bf16.vlgmr.msra.gmra.mxu2 %vm791_vm2, %v1504_v49 }
 0x1d5   : > { %1437 = vmatmul.msk.bf16.gmra.mxu2 %vm791_vm2, %v1505_v50 }
 0x1df   : > { %v731_v51 = vpop.f32.mrf.mxu3 }
 0x1e0   : > { %v732_v58 = vadd.f32 %v731_v51, %v669_v41  ;;  %v872_v41 = vpop.permute.xlu2 %871 }
 0x1e2   : > { %v742_v63 = vmax.f32 %v732_v58, 0.0 }
 0x1e7   : > { %v733_v52 = vpop.f32.mrf.mxu3 }
 0x1e8   : > { %v734_v56 = vadd.f32 %v733_v52, %v674_v37  ;;  %v867_v37 = vpop.permute.xlu1 %866 }
 0x1ea   : > { %v744_v61 = vmax.f32 %v734_v56, 0.0 }
 0x1ec   : > { %v750_v0 = vpack.c.bf16 %v744_v61, %v742_v63 }
 0x1ef   : > { %v736_v53 = vpop.f32.mrf.mxu3 }
 0x1f0   : > { %v737_v54 = vadd.f32 %v736_v53, %v679_v33  ;;  %v887_v53 = vpop.permute.xlu2 %886 }
 0x1f2   : > { %v746_v59 = vmax.f32 %v737_v54, 0.0 }
 0x1f7   : > { %v738_v55 = vpop.f32.mrf.mxu3 }
 0x1f8   : > { %v739_v57 = vadd.f32 %v738_v55, %v684_v35 }
 0x1fa   : > { %v748_v60 = vmax.f32 %v739_v57, 0.0  ;;  %v892_v57 = vpop.permute.xlu0 %891 }
 0x1fc   : > { %v752_v62 = vpack.c.bf16 %v748_v60, %v746_v59 }
 0x1fe   : > { %823 = vmatpush.bf16.msra.mxu3 %v752_v62 }
 0x202   : > { %824 = vmatpush.bf16.msra.mxu3 %v750_v0 }
 0x205   : > { %1438 = vmatmul.msk.bf16.vlgmr.msra.gmra.mxu3 %vm791_vm2, %v1504_v49  ;;  %v882_v49 = vpop.permute.xlu1 %881 }
 0x20d   : > { %v897_v61 = vpop.permute.xlu1 %896 }
 0x215   : > { %1439 = vmatmul.msk.bf16.gmra.mxu3 %vm791_vm2, %v1505_v50 }
 0x248   : > { %v807_v1 = vpop.f32.mrf.mxu2 }
 0x249   : > { %v808_v12 = vadd.f32 %v807_v1, %v764_v11  ;;  %v902_v1 = vpop.permute.xlu2 %901 }
 0x24b   : > { %v836_v17 = vmax.f32 %v808_v12, 0.0 }
 0x250   : > { %v809_v2 = vpop.f32.mrf.mxu2 }
 0x251   : > { %v810_v9 = vadd.f32 %v809_v2, %v769_v7 }
 0x253   : > { %v838_v15 = vmax.f32 %v810_v9, 0.0 }
 0x255   : > { %v844_v18 = vpack.c.bf16 %v838_v15, %v836_v17  ;;  %v1017_v17 = vld [vmem:[%s1983_s9 + $0x38] sm:$0xff] }
 0x256   : > { %1190 = vmatpush.msra.mxu0 %v1017_v17 }
 0x258   : > { %v812_v4 = vpop.f32.mrf.mxu2 }
 0x259   : > { %v813_v6 = vadd.f32 %v812_v4, %v774_v3 }
 0x25b   : > { %v840_v13 = vmax.f32 %v813_v6, 0.0 }
 0x260   : > { %v814_v8 = vpop.f32.mrf.mxu2 }
 0x261   : > { %v815_v10 = vadd.f32 %v814_v8, %v779_v5 }
 0x263   : > { %v842_v14 = vmax.f32 %v815_v10, 0.0 }
 0x265   : > { %v846_v16 = vpack.c.bf16 %v842_v14, %v840_v13 }
 0x267   : > { %942 = vmatpush.bf16.msrb.mxu2 %v846_v16 }
 0x26b   : > { %943 = vmatpush.bf16.msrb.mxu2 %v844_v18  ;;  %v1016_v18 = vld [vmem:[%s1983_s9 + $0x30] sm:$0xff] }
 0x26c   : > { %1191 = vmatpush.msra.mxu0 %v1016_v18 }
 0x26e   : > { %1456 = vmatmul.msk.bf16.vlgmr.msrb.gmra.mxu2 %vm791_vm2, %v1506_v19 }
 0x26f   : > { %1510 = vmatpush.msra.mxu2 %v1017_v17 }
 0x271   : > { %1511 = vmatpush.msra.mxu2 %v1016_v18 }
 0x27e   : > { %1457 = vmatmul.msk.bf16.gmra.mxu2 %vm791_vm2, %v1507_v20 }
 0x288   : > { %v826_v21 = vpop.f32.mrf.mxu3 }
 0x289   : > { %v827_v30 = vadd.f32 %v826_v21, %v764_v11 }
 0x28b   : > { %v837_v35 = vmax.f32 %v827_v30, 0.0 }
 0x28e   : > { %1458 = vmatmul.msk.bf16.gmra.mxu2 %vm791_vm2, %v1508_v22 }
 0x290   : > { %v828_v23 = vpop.f32.mrf.mxu3 }
 0x291   : > { %v829_v28 = vadd.f32 %v828_v23, %v769_v7 }
 0x293   : > { %v839_v33 = vmax.f32 %v829_v28, 0.0 }
 0x295   : > { %v845_v36 = vpack.c.bf16 %v839_v33, %v837_v35 }
 0x298   : > { %v831_v24 = vpop.f32.mrf.mxu3 }
 0x299   : > { %v832_v26 = vadd.f32 %v831_v24, %v774_v3  ;;  %v1013_v24 = vld [vmem:[%s1983_s9 + $0x18] sm:$0xff] }
 0x29b   : > { %v841_v31 = vmax.f32 %v832_v26, 0.0  ;;  %v1011_v26 = vld [vmem:[%s1983_s9 + $0x8] sm:$0xff] }
 0x29e   : > { %1459 = vmatmul.msk.bf16.gmra.mxu2 %vm791_vm2, %v1509_v25 }
 0x2a0   : > { %v833_v27 = vpop.f32.mrf.mxu3 }
 0x2a1   : > { %v834_v29 = vadd.f32 %v833_v27, %v779_v5 }
 0x2a3   : > { %v843_v32 = vmax.f32 %v834_v29, 0.0  ;;  %v1010_v29 = vld [vmem:[%s1983_s9] sm:$0xff] }
 0x2a5   : > { %v847_v34 = vpack.c.bf16 %v843_v32, %v841_v31 }
 0x2a7   : > { %971 = vmatpush.bf16.msrb.mxu3 %v847_v34 }
 0x2ab   : > { %972 = vmatpush.bf16.msrb.mxu3 %v845_v36 }
 0x2ae   : > { %1460 = vmatmul.msk.bf16.vlgmr.msrb.gmra.mxu3 %vm791_vm2, %v1506_v19  ;;  %v1015_v19 = vld [vmem:[%s1983_s9 + $0x28] sm:$0xff] }
 0x2af   : > { %1192 = vmatpush.msra.mxu0 %v1015_v19  ;;  %1512 = vmatpush.msra.mxu2 %v1015_v19 }
 0x2be   : > { %1461 = vmatmul.msk.bf16.gmra.mxu3 %vm791_vm2, %v1507_v20 }
 0x2ce   : > { %1462 = vmatmul.msk.bf16.gmra.mxu3 %vm791_vm2, %v1508_v22  ;;  %v1014_v22 = vld [vmem:[%s1983_s9 + $0x20] sm:$0xff] }
 0x2cf   : > { %1193 = vmatpush.msra.mxu0 %v1014_v22  ;;  %1513 = vmatpush.msra.mxu2 %v1014_v22 }
 0x2d1   : > { %1194 = vmatpush.msra.mxu0 %v1013_v24  ;;  %1514 = vmatpush.msra.mxu2 %v1013_v24 }
 0x2de   : > { %1463 = vmatmul.msk.bf16.gmra.mxu3 %vm791_vm2, %v1509_v25  ;;  %v1012_v25 = vld [vmem:[%s1983_s9 + $0x10] sm:$0xff] }
 0x2df   : > { %1195 = vmatpush.msra.mxu0 %v1012_v25  ;;  %1515 = vmatpush.msra.mxu2 %v1012_v25 }
 0x2e1   : > { %1196 = vmatpush.msra.mxu0 %v1011_v26  ;;  %1516 = vmatpush.msra.mxu2 %v1011_v26 }
 0x2e3   : > { %1197 = vmatpush.msra.mxu0 %v1010_v29  ;;  %1517 = vmatpush.msra.mxu2 %v1010_v29 }
 0x2f1   : > { %v945_v38 = vpop.f32.mrf.mxu2 }
 0x2f2   : > { %v946_v39 = vadd.f32 %v945_v38, %v867_v37 }
 0x2f4   : > { %v994_v40 = vmax.f32 %v946_v39, 0.0 }
 0x2f6   : > { %1022 = vxpose.xlu0.b32.start [1/8] (short) %v994_v40, 128 }
 0x2f9   : > { %v947_v42 = vpop.f32.mrf.mxu2 }
 0x2fa   : > { %v948_v43 = vadd.f32 %v947_v42, %v872_v41 }
 0x2fc   : > { %v996_v44 = vmax.f32 %v948_v43, 0.0 }
 0x2fe   : > { %1023 = vxpose.xlu0.b32.cont [2/8] (short) %v996_v44, 128 }
 0x301   : > { %v950_v46 = vpop.f32.mrf.mxu2 }
 0x302   : > { %v951_v47 = vadd.f32 %v950_v46, %v877_v45 }
 0x304   : > { %v998_v48 = vmax.f32 %v951_v47, 0.0 }
 0x306   : > { %1024 = vxpose.xlu0.b32.cont [3/8] (short) %v998_v48, 128 }
 0x309   : > { %v952_v50 = vpop.f32.mrf.mxu2 }
 0x30a   : > { %v953_v51 = vadd.f32 %v952_v50, %v882_v49 }
 0x30c   : > { %v1000_v52 = vmax.f32 %v953_v51, 0.0 }
 0x30e   : > { %1025 = vxpose.xlu0.b32.cont [4/8] (short) %v1000_v52, 128 }
 0x311   : > { %v955_v54 = vpop.f32.mrf.mxu2 }
 0x312   : > { %v956_v55 = vadd.f32 %v955_v54, %v887_v53 }
 0x314   : > { %v1002_v56 = vmax.f32 %v956_v55, 0.0 }
 0x316   : > { %1026 = vxpose.xlu0.b32.cont [5/8] (short) %v1002_v56, 128 }
 0x319   : > { %v957_v58 = vpop.f32.mrf.mxu2 }
 0x31a   : > { %v958_v59 = vadd.f32 %v957_v58, %v892_v57 }
 0x31c   : > { %v1004_v60 = vmax.f32 %v958_v59, 0.0 }
 0x31e   : > { %1027 = vxpose.xlu0.b32.cont [6/8] (short) %v1004_v60, 128 }
 0x321   : > { %v960_v62 = vpop.f32.mrf.mxu2 }
 0x322   : > { %v961_v63 = vadd.f32 %v960_v62, %v897_v61 }
 0x324   : > { %v1006_v0 = vmax.f32 %v961_v63, 0.0 }
 0x326   : > { %1028 = vxpose.xlu0.b32.cont [7/8] (short) %v1006_v0, 128 }
 0x329   : > { %v962_v2 = vpop.f32.mrf.mxu2 }
 0x32a   : > { %v963_v3 = vadd.f32 %v962_v2, %v902_v1 }
 0x32c   : > { %v1008_v4 = vmax.f32 %v963_v3, 0.0 }
 0x32e   : > { %1029 = vxpose.xlu0.b32.end [8/8] (short) %v1008_v4, 128 }
 0x331   : > { %v974_v5 = vpop.f32.mrf.mxu3 }
 0x332   : > { %v975_v6 = vadd.f32 %v974_v5, %v867_v37 }
 0x334   : > { %v995_v7 = vmax.f32 %v975_v6, 0.0 }
 0x336   : > { %1054 = vxpose.xlu1.b32.start [1/8] (short) %v995_v7, 128 }
 0x339   : > { %v976_v8 = vpop.f32.mrf.mxu3 }
 0x33a   : > { %v977_v9 = vadd.f32 %v976_v8, %v872_v41 }
 0x33c   : > { %v997_v10 = vmax.f32 %v977_v9, 0.0 }
 0x33e   : > { %1055 = vxpose.xlu1.b32.cont [2/8] (short) %v997_v10, 128 }
 0x341   : > { %v979_v11 = vpop.f32.mrf.mxu3 }
 0x342   : > { %v980_v12 = vadd.f32 %v979_v11, %v877_v45 }
 0x344   : > { %v999_v13 = vmax.f32 %v980_v12, 0.0 }
 0x346   : > { %1056 = vxpose.xlu1.b32.cont [3/8] (short) %v999_v13, 128 }
 0x349   : > { %v981_v14 = vpop.f32.mrf.mxu3 }
 0x34a   : > { %v982_v15 = vadd.f32 %v981_v14, %v882_v49 }
 0x34c   : > { %v1001_v16 = vmax.f32 %v982_v15, 0.0 }
 0x34e   : > { %1057 = vxpose.xlu1.b32.cont [4/8] (short) %v1001_v16, 128 }
 0x351   : > { %v984_v20 = vpop.f32.mrf.mxu3 }
 0x352   : > { %v985_v21 = vadd.f32 %v984_v20, %v887_v53 }
 0x354   : > { %v1003_v23 = vmax.f32 %v985_v21, 0.0 }
 0x356   : > { %1058 = vxpose.xlu1.b32.cont [5/8] (short) %v1003_v23, 128 }
 0x359   : > { %v986_v27 = vpop.f32.mrf.mxu3 }
 0x35a   : > { %v987_v28 = vadd.f32 %v986_v27, %v892_v57 }
 0x35c   : > { %v1005_v30 = vmax.f32 %v987_v28, 0.0 }
 0x35e   : > { %1059 = vxpose.xlu1.b32.cont [6/8] (short) %v1005_v30, 128 }
 0x361   : > { %v989_v31 = vpop.f32.mrf.mxu3 }
 0x362   : > { %v990_v32 = vadd.f32 %v989_v31, %v897_v61  ;;  %v1852_v61 = vld [vmem:[%s1984_s10] ss:$0 sm:$0xff] }
 0x364   : > { %v1007_v33 = vmax.f32 %v990_v32, 0.0 }
 0x366   : > { %1060 = vxpose.xlu1.b32.cont [7/8] (short) %v1007_v33, 128 }
 0x369   : > { %v991_v34 = vpop.f32.mrf.mxu3 }
 0x36a   : > { %v992_v35 = vadd.f32 %v991_v34, %v902_v1 }
 0x36c   : > { %v1009_v36 = vmax.f32 %v992_v35, 0.0 }
 0x36e   : > { %1061 = vxpose.xlu1.b32.end [8/8] (short) %v1009_v36, 128 }
 0x39a   : > { %v1038_v37 = vpop.trf.xlu0 }
 0x39b   : > { %1464 = vmatmul.msk.f32.vlgmr.msra.gmra.mxu0 %vm696_vm1, %v1038_v37 }
 0x3a2   : > { %v1039_v38 = vpop.trf.xlu0 }
 0x3a3   : > { %1465 = vmatmul.msk.f32.gmra.mxu0 %vm696_vm1, %v1039_v38 }
 0x3aa   : > { %v1040_v39 = vpop.trf.xlu0 }
 0x3ab   : > { %1466 = vmatmul.msk.f32.gmra.mxu0 %vm696_vm1, %v1040_v39 }
 0x3b2   : > { %v1041_v40 = vpop.trf.xlu0 }
 0x3b3   : > { %1467 = vmatmul.msk.f32.gmra.mxu0 %vm696_vm1, %v1041_v40 }
 0x3ba   : > { %v1042_v41 = vpop.trf.xlu0 }
 0x3bb   : > { %1468 = vmatmul.msk.f32.gmra.mxu0 %vm696_vm1, %v1042_v41 }
 0x3c2   : > { %v1043_v42 = vpop.trf.xlu0 }
 0x3c3   : > { %1469 = vmatmul.msk.f32.gmra.mxu0 %vm696_vm1, %v1043_v42 }
 0x3ca   : > { %v1044_v43 = vpop.trf.xlu0 }
 0x3cb   : > { %1470 = vmatmul.msk.f32.gmra.mxu0 %vm696_vm1, %v1044_v43 }
 0x3d2   : > { %v1045_v44 = vpop.trf.xlu0 }
 0x3d3   : > { %1471 = vmatmul.msk.f32.gmra.mxu0 %vm696_vm1, %v1045_v44 }
 0x3da   : > { %v1046_v45 = vpop.trf.xlu0  ;;  %v1070_v46 = vpop.trf.xlu1 }
 0x3db   : > { %1472 = vmatmul.msk.f32.gmra.mxu0 %vm696_vm1, %v1046_v45 }
 0x3e2   : > { %v1047_v47 = vpop.trf.xlu0  ;;  %v1071_v48 = vpop.trf.xlu1 }
 0x3e3   : > { %1473 = vmatmul.msk.f32.gmra.mxu0 %vm696_vm1, %v1047_v47 }
 0x3ea   : > { %v1048_v49 = vpop.trf.xlu0  ;;  %v1072_v50 = vpop.trf.xlu1 }
 0x3eb   : > { %1474 = vmatmul.msk.f32.gmra.mxu0 %vm696_vm1, %v1048_v49 }
 0x3f2   : > { %v1049_v51 = vpop.trf.xlu0  ;;  %v1073_v52 = vpop.trf.xlu1 }
 0x3f3   : > { %1475 = vmatmul.msk.f32.gmra.mxu0 %vm696_vm1, %v1049_v51 }
 0x3fa   : > { %v1050_v53 = vpop.trf.xlu0  ;;  %v1074_v54 = vpop.trf.xlu1 }
 0x3fb   : > { %1476 = vmatmul.msk.f32.gmra.mxu0 %vm696_vm1, %v1050_v53 }
 0x402   : > { %v1051_v55 = vpop.trf.xlu0  ;;  %v1075_v56 = vpop.trf.xlu1 }
 0x403   : > { %1477 = vmatmul.msk.f32.gmra.mxu0 %vm696_vm1, %v1051_v55 }
 0x40a   : > { %v1052_v57 = vpop.trf.xlu0  ;;  %v1076_v58 = vpop.trf.xlu1 }
 0x40b   : > { %1478 = vmatmul.msk.f32.gmra.mxu0 %vm696_vm1, %v1052_v57  ;;  %1486 = vmatmul.msk.f32.vlgmr.msra.gmra.mxu2 %vm696_vm1, %v1076_v58 }
 0x412   : > { %v1053_v59 = vpop.trf.xlu0  ;;  %v1077_v60 = vpop.trf.xlu1 }
 0x413   : > { %1479 = vmatmul.msk.f32.gmra.mxu0 %vm696_vm1, %v1053_v59  ;;  %1487 = vmatmul.msk.f32.gmra.mxu2 %vm696_vm1, %v1077_v60 }
 0x418   : > { %v1199_v62 = vpop.f32.mrf.mxu0 }
 0x419   : > { %v1200_v63 = vadd.f32 %v1852_v61, %v1199_v62 }
 0x41a   : > { %v1078_v0 = vpop.trf.xlu1 }
 0x41b   : > { %1295 = vst.msk [vmem:[%s1859_s22] sm:$0xff] %vm515_vm0, %v1200_v63  ;;  %1480 = vmatmul.msk.f32.gmra.mxu0 %vm696_vm1, %v1070_v46  ;;  %1488 = vmatmul.msk.f32.gmra.mxu2 %vm696_vm1, %v1078_v0 }
 0x420   : > { %v1202_v1 = vpop.f32.mrf.mxu0 }
 0x421   : > { %v1203_v2 = vadd.f32 %v1852_v61, %v1202_v1 }
 0x422   : > { %v1079_v3 = vpop.trf.xlu1 }
 0x423   : > { %1296 = vst.msk [vmem:[%s1859_s22 + $0x8] sm:$0xff] %vm515_vm0, %v1203_v2  ;;  %1481 = vmatmul.msk.f32.gmra.mxu0 %vm696_vm1, %v1071_v48  ;;  %1489 = vmatmul.msk.f32.gmra.mxu2 %vm696_vm1, %v1079_v3 }
 0x428   : > { %v1205_v4 = vpop.f32.mrf.mxu0 }
 0x429   : > { %v1206_v5 = vadd.f32 %v1852_v61, %v1205_v4 }
 0x42a   : > { %v1080_v6 = vpop.trf.xlu1 }
 0x42b   : > { %1297 = vst.msk [vmem:[%s1859_s22 + $0x10] sm:$0xff] %vm515_vm0, %v1206_v5  ;;  %1482 = vmatmul.msk.f32.gmra.mxu0 %vm696_vm1, %v1072_v50  ;;  %1490 = vmatmul.msk.f32.gmra.mxu2 %vm696_vm1, %v1080_v6 }
 0x430   : > { %v1208_v7 = vpop.f32.mrf.mxu0 }
 0x431   : > { %v1209_v8 = vadd.f32 %v1852_v61, %v1208_v7 }
 0x432   : > { %v1081_v9 = vpop.trf.xlu1 }
 0x433   : > { %1298 = vst.msk [vmem:[%s1859_s22 + $0x18] sm:$0xff] %vm515_vm0, %v1209_v8  ;;  %1483 = vmatmul.msk.f32.gmra.mxu0 %vm696_vm1, %v1073_v52  ;;  %1491 = vmatmul.msk.f32.gmra.mxu2 %vm696_vm1, %v1081_v9 }
 0x438   : > { %v1211_v10 = vpop.f32.mrf.mxu0 }
 0x439   : > { %v1212_v11 = vadd.f32 %v1852_v61, %v1211_v10 }
 0x43a   : > { %v1082_v12 = vpop.trf.xlu1 }
 0x43b   : > { %1299 = vst.msk [vmem:[%s1859_s22 + $0x20] sm:$0xff] %vm515_vm0, %v1212_v11  ;;  %1484 = vmatmul.msk.f32.gmra.mxu0 %vm696_vm1, %v1074_v54  ;;  %1492 = vmatmul.msk.f32.gmra.mxu2 %vm696_vm1, %v1082_v12 }
 0x440   : > { %v1214_v13 = vpop.f32.mrf.mxu0 }
 0x441   : > { %v1215_v14 = vadd.f32 %v1852_v61, %v1214_v13 }
 0x442   : > { %v1083_v15 = vpop.trf.xlu1 }
 0x443   : > { %1300 = vst.msk [vmem:[%s1859_s22 + $0x28] sm:$0xff] %vm515_vm0, %v1215_v14  ;;  %1485 = vmatmul.msk.f32.gmra.mxu0 %vm696_vm1, %v1075_v56  ;;  %1493 = vmatmul.msk.f32.gmra.mxu2 %vm696_vm1, %v1083_v15 }
 0x448   : > { %v1217_v16 = vpop.f32.mrf.mxu0 }
 0x449   : > { %v1218_v17 = vadd.f32 %v1852_v61, %v1217_v16 }
 0x44a   : > { %v1084_v18 = vpop.trf.xlu1 }
 0x44b   : > { %1301 = vst.msk [vmem:[%s1859_s22 + $0x30] sm:$0xff] %vm515_vm0, %v1218_v17  ;;  %1494 = vmatmul.msk.f32.gmra.mxu2 %vm696_vm1, %v1084_v18 }
 0x450   : > { %v1220_v19 = vpop.f32.mrf.mxu0 }
 0x451   : > { %v1221_v20 = vadd.f32 %v1852_v61, %v1220_v19 }
 0x452   : > { %v1085_v21 = vpop.trf.xlu1 }
 0x453   : > { %1302 = vst.msk [vmem:[%s1859_s22 + $0x38] sm:$0xff] %vm515_vm0, %v1221_v20  ;;  %1495 = vmatmul.msk.f32.gmra.mxu2 %vm696_vm1, %v1085_v21 }
 0x458   : > { %v1223_v22 = vpop.f32.mrf.mxu0 }
 0x459   : > { %v1224_v23 = vadd.f32 %v1852_v61, %v1223_v22 }
 0x45b   : > { %1303 = vst.msk [vmem:[%s1859_s22 + $0x40] sm:$0xff] %vm515_vm0, %v1224_v23 }
 0x460   : > { %v1226_v24 = vpop.f32.mrf.mxu0 }
 0x461   : > { %v1227_v25 = vadd.f32 %v1852_v61, %v1226_v24 }
 0x463   : > { %1304 = vst.msk [vmem:[%s1859_s22 + $0x48] sm:$0xff] %vm515_vm0, %v1227_v25 }
 0x468   : > { %v1229_v26 = vpop.f32.mrf.mxu0 }
 0x469   : > { %v1230_v27 = vadd.f32 %v1852_v61, %v1229_v26 }
 0x46b   : > { %1305 = vst.msk [vmem:[%s1859_s22 + $0x50] sm:$0xff] %vm515_vm0, %v1230_v27 }
 0x470   : > { %v1232_v28 = vpop.f32.mrf.mxu0 }
 0x471   : > { %v1233_v29 = vadd.f32 %v1852_v61, %v1232_v28 }
 0x473   : > { %1306 = vst.msk [vmem:[%s1859_s22 + $0x58] sm:$0xff] %vm515_vm0, %v1233_v29 }
 0x478   : > { %v1235_v30 = vpop.f32.mrf.mxu0 }
 0x479   : > { %v1236_v31 = vadd.f32 %v1852_v61, %v1235_v30 }
 0x47b   : > { %1307 = vst.msk [vmem:[%s1859_s22 + $0x60] sm:$0xff] %vm515_vm0, %v1236_v31 }
 0x480   : > { %v1238_v32 = vpop.f32.mrf.mxu0 }
 0x481   : > { %v1239_v33 = vadd.f32 %v1852_v61, %v1238_v32 }
 0x483   : > { %1308 = vst.msk [vmem:[%s1859_s22 + $0x68] sm:$0xff] %vm515_vm0, %v1239_v33 }
 0x488   : > { %v1241_v34 = vpop.f32.mrf.mxu0 }
 0x489   : > { %v1242_v35 = vadd.f32 %v1852_v61, %v1241_v34 }
 0x48b   : > { %1309 = vst.msk [vmem:[%s1859_s22 + $0x70] sm:$0xff] %vm515_vm0, %v1242_v35 }
 0x48e   : > { %v1265_v36 = vpop.f32.mrf.mxu2 }
 0x48f   : > { %v1266_v37 = vadd.f32 %v1852_v61, %v1265_v36 }
 0x490   : > { %v1244_v38 = vpop.f32.mrf.mxu0 }
 0x491   : > { %v1245_v39 = vadd.f32 %v1852_v61, %v1244_v38  ;;  %1317 = vst.msk [vmem:[%s1859_s22 + $0xb0] sm:$0xff] %vm515_vm0, %v1266_v37 }
 0x493   : > { %1310 = vst.msk [vmem:[%s1859_s22 + $0x78] sm:$0xff] %vm515_vm0, %v1245_v39 }
 0x496   : > { %v1268_v40 = vpop.f32.mrf.mxu2 }
 0x497   : > { %v1269_v41 = vadd.f32 %v1852_v61, %v1268_v40 }
 0x498   : > { %v1247_v42 = vpop.f32.mrf.mxu0 }
 0x499   : > { %v1248_v43 = vadd.f32 %v1852_v61, %v1247_v42  ;;  %1318 = vst.msk [vmem:[%s1859_s22 + $0xb8] sm:$0xff] %vm515_vm0, %v1269_v41 }
 0x49b   : > { %1311 = vst.msk [vmem:[%s1859_s22 + $0x80] sm:$0xff] %vm515_vm0, %v1248_v43 }
 0x49e   : > { %v1271_v44 = vpop.f32.mrf.mxu2 }
 0x49f   : > { %v1272_v45 = vadd.f32 %v1852_v61, %v1271_v44 }
 0x4a0   : > { %v1250_v46 = vpop.f32.mrf.mxu0 }
 0x4a1   : > { %v1251_v47 = vadd.f32 %v1852_v61, %v1250_v46  ;;  %1319 = vst.msk [vmem:[%s1859_s22 + $0xc0] sm:$0xff] %vm515_vm0, %v1272_v45 }
 0x4a3   : > { %1312 = vst.msk [vmem:[%s1859_s22 + $0x88] sm:$0xff] %vm515_vm0, %v1251_v47 }
 0x4a6   : > { %v1274_v48 = vpop.f32.mrf.mxu2 }
 0x4a7   : > { %v1275_v49 = vadd.f32 %v1852_v61, %v1274_v48 }
 0x4a8   : > { %v1253_v50 = vpop.f32.mrf.mxu0 }
 0x4a9   : > { %v1254_v51 = vadd.f32 %v1852_v61, %v1253_v50  ;;  %1320 = vst.msk [vmem:[%s1859_s22 + $0xc8] sm:$0xff] %vm515_vm0, %v1275_v49 }
 0x4ab   : > { %1313 = vst.msk [vmem:[%s1859_s22 + $0x90] sm:$0xff] %vm515_vm0, %v1254_v51 }
 0x4ae   : > { %v1277_v52 = vpop.f32.mrf.mxu2 }
 0x4af   : > { %v1278_v53 = vadd.f32 %v1852_v61, %v1277_v52 }
 0x4b0   : > { %v1256_v54 = vpop.f32.mrf.mxu0 }
 0x4b1   : > { %v1257_v55 = vadd.f32 %v1852_v61, %v1256_v54  ;;  %1321 = vst.msk [vmem:[%s1859_s22 + $0xd0] sm:$0xff] %vm515_vm0, %v1278_v53 }
 0x4b3   : > { %1314 = vst.msk [vmem:[%s1859_s22 + $0x98] sm:$0xff] %vm515_vm0, %v1257_v55 }
 0x4b6   : > { %v1280_v56 = vpop.f32.mrf.mxu2 }
 0x4b7   : > { %v1281_v57 = vadd.f32 %v1852_v61, %v1280_v56 }
 0x4b8   : > { %v1259_v58 = vpop.f32.mrf.mxu0 }
 0x4b9   : > { %v1260_v59 = vadd.f32 %v1852_v61, %v1259_v58  ;;  %1322 = vst.msk [vmem:[%s1859_s22 + $0xd8] sm:$0xff] %vm515_vm0, %v1281_v57 }
 0x4bb   : > { %1315 = vst.msk [vmem:[%s1859_s22 + $0xa0] sm:$0xff] %vm515_vm0, %v1260_v59 }
 0x4be   : > { %v1283_v60 = vpop.f32.mrf.mxu2 }
 0x4bf   : > { %v1284_v62 = vadd.f32 %v1852_v61, %v1283_v60 }
 0x4c0   : > { %v1262_v63 = vpop.f32.mrf.mxu0 }
 0x4c1   : > { %v1263_v0 = vadd.f32 %v1852_v61, %v1262_v63  ;;  %1323 = vst.msk [vmem:[%s1859_s22 + $0xe0] sm:$0xff] %vm515_vm0, %v1284_v62 }
 0x4c3   : > { %1316 = vst.msk [vmem:[%s1859_s22 + $0xa8] sm:$0xff] %vm515_vm0, %v1263_v0 }
 0x4c6   : > { %v1286_v1 = vpop.f32.mrf.mxu2 }
 0x4c7   : > { %v1287_v2 = vadd.f32 %v1852_v61, %v1286_v1 }
 0x4c9   : > { %1324 = vst.msk [vmem:[%s1859_s22 + $0xe8] sm:$0xff] %vm515_vm0, %v1287_v2 }
 0x4ce   : > { %v1289_v3 = vpop.f32.mrf.mxu2 }
 0x4cf   : > { %v1290_v4 = vadd.f32 %v1852_v61, %v1289_v3 }
 0x4d1   : > { %1325 = vst.msk [vmem:[%s1859_s22 + $0xf0] sm:$0xff] %vm515_vm0, %v1290_v4 }
 0x4d6   : > { %v1292_v5 = vpop.f32.mrf.mxu2 }
 0x4d7   : > { %v1293_v6 = vadd.f32 %v1852_v61, %v1292_v5 }
 0x4d9   : > { %1326 = vst.msk [vmem:[%s1859_s22 + $0xf8] sm:$0xff] %vm515_vm0, %v1293_v6 }
 0x4da PF: > { %s21_s17 = sadd.s32 1, %s1538_s17  }
 0x4db   : > { %p18_p4 = scmp.ge.s32.totalorder %s21_s17, 4  }
 0x4dd   :  { %20 = sbr.rel (!%p18_p4) target bundleno = 1 (0x1), region = 94 }

</bundles_post_ra>
